<compile_context>
chip_gen: v7x
topology: tpu7x:2x2x1
jax: 0.10.0
libtpu: 0.0.40
codegen_flags: <defaults>
</compile_context>

<pallas_src>
import functools

import jax
import jax.numpy as jnp
from jax.experimental import pallas as pl
from jax.experimental.pallas import tpu as pltpu

_LANES = 128


def _disc_kernel(x_ref, w1_ref, b1_ref, w2_ref, b2_ref, w3_ref, b3_ref, o_ref):
    x = x_ref[...]                                            # (TB, dim) bf16

    # Layers 1-2: bf16 MXU matmuls with f32 accumulation; bias+ReLU on VPU.
    h1 = jnp.dot(x, w1_ref[...], preferred_element_type=jnp.float32)
    h1 = jnp.maximum(h1 + b1_ref[...], 0.0)

    h2 = jnp.dot(h1.astype(w2_ref.dtype), w2_ref[...],
                 preferred_element_type=jnp.float32)
    h2 = jnp.maximum(h2 + b2_ref[...], 0.0)

    # Layer 3 (H -> 1): elementwise mul + cross-lane reduce (VPU + XLU)
    # instead of a wasteful N=1 MXU matmul.  b3 is an SMEM scalar.
    logits = jnp.sum(h2 * w3_ref[...], axis=-1, keepdims=True) + b3_ref[0, 0]

    # Sigmoid: exp and approx reciprocal both land in the EUP slot.
    sig = pl.reciprocal(1.0 + jnp.exp(-logits), approx=True)  # (TB, 1)

    # Lane-dense store: broadcast across 128 lanes; wrapper keeps column 0.
    o_ref[...] = jnp.broadcast_to(sig, o_ref.shape).astype(o_ref.dtype)


def _round_up(x, m):
    return ((x + m - 1) // m) * m


@functools.partial(jax.jit, static_argnames=("block_b",))
def discriminator_forward(x, w1, b1, w2, b2, w3, b3, *, block_b=512):
    """x:[B,dim]; w*: [in,out] (torch weight.T); b*: [1,out]. Returns [B,1]."""
    batch, dim = x.shape
    hidden = w1.shape[1]

    # Batch tile: multiple of 128 (full MXU rows on v5e, lane-dense output
    # tiles), clamped so tiny batches don't over-pad.  Default 512 keeps
    # per-tile VMEM well under the 32 MiB scoped limit (and v7x's 64 MiB).
    tb = min(_round_up(block_b, _LANES), _round_up(batch, _LANES))
    padded = _round_up(batch, tb)
    num_tiles = padded // tb

    if padded != batch:
        x = jnp.pad(x, ((0, padded - batch), (0, 0)))

    # bf16 MXU operands (halves HBM bytes); accumulation stays f32 in-kernel.
    xc = x.astype(jnp.bfloat16)
    w1c = w1.astype(jnp.bfloat16)
    w2c = w2.astype(jnp.bfloat16)
    w3_row = w3.reshape(1, hidden).astype(jnp.float32)  # consumed on VPU/XLU

    flops = 2 * padded * (dim * hidden + hidden * hidden + hidden)
    bytes_accessed = (
        padded * dim * 2                        # x (bf16)
        + (dim * hidden + hidden * hidden) * 2  # w1, w2 (bf16)
        + (3 * hidden + 1) * 4                  # b1, b2, w3, b3 (f32)
        + padded * _LANES * 4                   # lane-padded output
    )

    out_padded = pl.pallas_call(
        _disc_kernel,
        out_shape=jax.ShapeDtypeStruct((padded, _LANES), jnp.float32),
        grid=(num_tiles,),
        in_specs=[
            pl.BlockSpec((tb, dim), lambda i: (i, 0)),          # x tile (pipelined)
            pl.BlockSpec((dim, hidden), lambda i: (0, 0)),      # w1 (VMEM-resident)
            pl.BlockSpec((1, hidden), lambda i: (0, 0)),        # b1
            pl.BlockSpec((hidden, hidden), lambda i: (0, 0)),   # w2
            pl.BlockSpec((1, hidden), lambda i: (0, 0)),        # b2
            pl.BlockSpec((1, hidden), lambda i: (0, 0)),        # w3 row
            pl.BlockSpec(memory_space=pltpu.MemorySpace.SMEM),  # b3 scalar
        ],
        out_specs=pl.BlockSpec((tb, _LANES), lambda i: (i, 0)),
        compiler_params=pltpu.CompilerParams(
            dimension_semantics=("parallel",)),
        cost_estimate=pl.CostEstimate(
            flops=flops, transcendentals=2 * padded,
            bytes_accessed=bytes_accessed),
    )(xc, w1c, b1, w2c, b2, w3_row, b3)

    return out_padded[:batch, :1]


def init_linear_params(key, in_features, out_features):
    """PyTorch-style Linear init: U(-1/sqrt(fan_in), 1/sqrt(fan_in)).

    Returns (W, b) with W shaped [in, out] (== torch weight.T), b [1, out].
    """
    kw, kb = jax.random.split(key)
    bound = 1.0 / jnp.sqrt(jnp.asarray(in_features, jnp.float32))
    w = jax.random.uniform(kw, (in_features, out_features), jnp.float32,
                           minval=-bound, maxval=bound)
    b = jax.random.uniform(kb, (1, out_features), jnp.float32,
                           minval=-bound, maxval=bound)
    return w, b


def reference_forward(x, w1, b1, w2, b2, w3, b3):
    h1 = jnp.maximum(x @ w1 + b1, 0.0)
    h2 = jnp.maximum(h1 @ w2 + b2, 0.0)
    return jax.nn.sigmoid(h2 @ w3 + b3)


if __name__ == "__main__":
    # Small but grid-exercising shapes; hidden_dim=256 is the module default
    # (a multiple of 128, so vreg lanes / MXU columns are fully occupied).
    batch, dim, hidden_dim = 300, 32, 256

    key = jax.random.PRNGKey(0)
    k_x, k1, k2, k3 = jax.random.split(key, 4)

    x = jax.random.normal(k_x, (batch, dim), jnp.float32)
    w1, b1 = init_linear_params(k1, dim, hidden_dim)
    w2, b2 = init_linear_params(k2, hidden_dim, hidden_dim)
    w3, b3 = init_linear_params(k3, hidden_dim, 1)

    # block_b=128 -> 3-step batch grid with a padded final tile.
    out = discriminator_forward(x, w1, b1, w2, b2, w3, b3, block_b=128)
    out = jax.block_until_ready(out)

    ref = reference_forward(x, w1, b1, w2, b2, w3, b3)
    assert out.shape == (batch, 1), out.shape
    # bf16 matmul operands + approx reciprocal vs. pure-f32 reference.
    max_err = float(jnp.max(jnp.abs(out - ref)))
    assert jnp.allclose(out, ref, atol=2e-2, rtol=2e-2), max_err

    print("KERNEL_OK")
</pallas_src>

<mosaic_0001>
module attributes {stable_mosaic.version = 11 : i64} {
  func.func @_disc_kernel(%arg0: i32, %arg1: memref<128x32xbf16, #tpu.memory_space<vmem>>, %arg2: memref<32x256xbf16, #tpu.memory_space<vmem>>, %arg3: memref<1x256xf32, #tpu.memory_space<vmem>>, %arg4: memref<256x256xbf16, #tpu.memory_space<vmem>>, %arg5: memref<1x256xf32, #tpu.memory_space<vmem>>, %arg6: memref<1x256xf32, #tpu.memory_space<vmem>>, %arg7: memref<1x1xf32, #tpu.memory_space<smem>>, %arg8: memref<128x128xf32, #tpu.memory_space<vmem>>) attributes {dimension_semantics = [#tpu.dimension_semantics<parallel>], iteration_bounds = array<i64: 3>, scalar_prefetch = 0 : i64, scratch_operands = 0 : i64, tpu.core_type = #tpu.core_type<tc>, window_params = [{transform_indices = @transform_0, window_bounds = array<i64: 128, 32>}, {pipeline_mode = #tpu.pipeline_mode<synchronous>, transform_indices = @transform_1, window_bounds = array<i64: 32, 256>}, {pipeline_mode = #tpu.pipeline_mode<synchronous>, transform_indices = @transform_2, window_bounds = array<i64: 1, 256>}, {pipeline_mode = #tpu.pipeline_mode<synchronous>, transform_indices = @transform_3, window_bounds = array<i64: 256, 256>}, {pipeline_mode = #tpu.pipeline_mode<synchronous>, transform_indices = @transform_4, window_bounds = array<i64: 1, 256>}, {pipeline_mode = #tpu.pipeline_mode<synchronous>, transform_indices = @transform_5, window_bounds = array<i64: 1, 256>}, {transform_indices = @transform_6, window_bounds = array<i64: 1, 1>}, {transform_indices = @transform_7, window_bounds = array<i64: 128, 128>}]} {
    %c0 = arith.constant 0 : index
    %c0_0 = arith.constant 0 : index
    %0 = vector.load %arg1[%c0, %c0_0] : memref<128x32xbf16, #tpu.memory_space<vmem>>, vector<128x32xbf16>
    %c0_1 = arith.constant 0 : index
    %c0_2 = arith.constant 0 : index
    %1 = vector.load %arg2[%c0_1, %c0_2] : memref<32x256xbf16, #tpu.memory_space<vmem>>, vector<32x256xbf16>
    %cst = arith.constant dense<0.000000e+00> : vector<128x256xf32>
    %2 = tpu.matmul %0, %1, %cst {dimension_numbers = #tpu.dot_dimension_numbers<[1], [0], [0], [1], [0, 0, 1, 1], [], []>} : vector<128x32xbf16>, vector<32x256xbf16>, vector<128x256xf32> -> vector<128x256xf32>
    %c0_3 = arith.constant 0 : index
    %c0_4 = arith.constant 0 : index
    %3 = vector.load %arg3[%c0_3, %c0_4] : memref<1x256xf32, #tpu.memory_space<vmem>>, vector<1x256xf32>
    %4 = vector.broadcast %3 : vector<1x256xf32> to vector<128x256xf32>
    %5 = arith.addf %2, %4 : vector<128x256xf32>
    %cst_5 = arith.constant 0.000000e+00 : f32
    %6 = vector.broadcast %cst_5 : f32 to vector<128x256xf32>
    %7 = arith.maximumf %5, %6 : vector<128x256xf32>
    %8 = arith.truncf %7 : vector<128x256xf32> to vector<128x256xbf16>
    %c0_6 = arith.constant 0 : index
    %c0_7 = arith.constant 0 : index
    %9 = vector.load %arg4[%c0_6, %c0_7] : memref<256x256xbf16, #tpu.memory_space<vmem>>, vector<256x256xbf16>
    %cst_8 = arith.constant dense<0.000000e+00> : vector<128x256xf32>
    %10 = tpu.matmul %8, %9, %cst_8 {dimension_numbers = #tpu.dot_dimension_numbers<[1], [0], [0], [1], [0, 0, 1, 1], [], []>} : vector<128x256xbf16>, vector<256x256xbf16>, vector<128x256xf32> -> vector<128x256xf32>
    %c0_9 = arith.constant 0 : index
    %c0_10 = arith.constant 0 : index
    %11 = vector.load %arg5[%c0_9, %c0_10] : memref<1x256xf32, #tpu.memory_space<vmem>>, vector<1x256xf32>
    %12 = vector.broadcast %11 : vector<1x256xf32> to vector<128x256xf32>
    %13 = arith.addf %10, %12 : vector<128x256xf32>
    %cst_11 = arith.constant 0.000000e+00 : f32
    %14 = vector.broadcast %cst_11 : f32 to vector<128x256xf32>
    %15 = arith.maximumf %13, %14 : vector<128x256xf32>
    %c0_12 = arith.constant 0 : index
    %c0_13 = arith.constant 0 : index
    %16 = vector.load %arg6[%c0_12, %c0_13] : memref<1x256xf32, #tpu.memory_space<vmem>>, vector<1x256xf32>
    %17 = vector.broadcast %16 : vector<1x256xf32> to vector<128x256xf32>
    %18 = arith.mulf %15, %17 : vector<128x256xf32>
    %cst_14 = arith.constant dense<0.000000e+00> : vector<128xf32>
    %19 = vector.multi_reduction <add>, %18, %cst_14 [1] : vector<128x256xf32> to vector<128xf32>
    %20 = vector.shape_cast %19 : vector<128xf32> to vector<128x1xf32>
    %c0_15 = arith.constant 0 : index
    %c0_16 = arith.constant 0 : index
    %21 = memref.load %arg7[%c0_15, %c0_16] : memref<1x1xf32, #tpu.memory_space<smem>>
    %22 = vector.broadcast %21 : f32 to vector<128x1xf32>
    %23 = arith.addf %20, %22 : vector<128x1xf32>
    %cst_17 = arith.constant 0.000000e+00 : f32
    %24 = vector.broadcast %cst_17 : f32 to vector<128x1xf32>
    %25 = arith.subf %24, %23 : vector<128x1xf32>
    %26 = math.exp %25 : vector<128x1xf32>
    %cst_18 = arith.constant 1.000000e+00 : f32
    %27 = vector.broadcast %cst_18 : f32 to vector<128x1xf32>
    %28 = arith.addf %27, %26 : vector<128x1xf32>
    %29 = tpu.reciprocal %28 {approx = true} : vector<128x1xf32> -> vector<128x1xf32>
    %30 = vector.shape_cast %29 : vector<128x1xf32> to vector<128x1xf32>
    %31 = vector.broadcast %30 : vector<128x1xf32> to vector<128x128xf32>
    %c0_19 = arith.constant 0 : index
    %c0_20 = arith.constant 0 : index
    %32 = vector.load %arg8[%c0_19, %c0_20] : memref<128x128xf32, #tpu.memory_space<vmem>>, vector<128x128xf32>
    tpu.vector_store %arg8[%c0_19, %c0_20], %31 {strides = array<i32>} : memref<128x128xf32, #tpu.memory_space<vmem>>, vector<128x128xf32>,
    return
  }
  func.func @transform_0(%arg0: i32) -> (i32, i32) {
    %c0_i32 = arith.constant 0 : i32
    %c0_i32_0 = arith.constant 0 : i32
    return %arg0, %c0_i32 : i32, i32
  }
  func.func @transform_1(%arg0: i32) -> (i32, i32) {
    %c0_i32 = arith.constant 0 : i32
    %c0_i32_0 = arith.constant 0 : i32
    %c0_i32_1 = arith.constant 0 : i32
    return %c0_i32, %c0_i32_0 : i32, i32
  }
  func.func @transform_2(%arg0: i32) -> (i32, i32) {
    %c0_i32 = arith.constant 0 : i32
    %c0_i32_0 = arith.constant 0 : i32
    %c0_i32_1 = arith.constant 0 : i32
    return %c0_i32, %c0_i32_0 : i32, i32
  }
  func.func @transform_3(%arg0: i32) -> (i32, i32) {
    %c0_i32 = arith.constant 0 : i32
    %c0_i32_0 = arith.constant 0 : i32
    %c0_i32_1 = arith.constant 0 : i32
    return %c0_i32, %c0_i32_0 : i32, i32
  }
  func.func @transform_4(%arg0: i32) -> (i32, i32) {
    %c0_i32 = arith.constant 0 : i32
    %c0_i32_0 = arith.constant 0 : i32
    %c0_i32_1 = arith.constant 0 : i32
    return %c0_i32, %c0_i32_0 : i32, i32
  }
  func.func @transform_5(%arg0: i32) -> (i32, i32) {
    %c0_i32 = arith.constant 0 : i32
    %c0_i32_0 = arith.constant 0 : i32
    %c0_i32_1 = arith.constant 0 : i32
    return %c0_i32, %c0_i32_0 : i32, i32
  }
  func.func @transform_6(%arg0: i32) -> (i32, i32) {
    %c0_i32 = arith.constant 0 : i32
    %c0_i32_0 = arith.constant 0 : i32
    %c0_i32_1 = arith.constant 0 : i32
    return %c0_i32, %c0_i32_0 : i32, i32
  }
  func.func @transform_7(%arg0: i32) -> (i32, i32) {
    %c0_i32 = arith.constant 0 : i32
    %c0_i32_0 = arith.constant 0 : i32
    return %arg0, %c0_i32 : i32, i32
  }
}

</mosaic_0001>

<bundles_post_ra>
// kernel: discriminator_forward.1
= control target key start
LH: loop header
LB: loop body
LE: loop exit
PB: predicated region body
PF: predicated region fallthrough
CT: control target
= control target key end

     0   :  { %s1455_s26 = smov 0   ;;  %s1773_s0 = inlined_call_operand.vmem [shape: bf16[384,32], index: 0, kind: input, shape index: {}]   ;;  %s1774_s1 = inlined_call_operand.vmem [shape: bf16[32,256], index: 1, kind: input, shape index: {}]   ;;  %s1775_s2 = inlined_call_operand.vmem [shape: f32[1,256], index: 2, kind: input, shape index: {}]   ;;  %s1776_s3 = inlined_call_operand.vmem [shape: bf16[256,256], index: 3, kind: input, shape index: {}]   ;;  %s1777_s4 = inlined_call_operand.vmem [shape: f32[1,256], index: 4, kind: input, shape index: {}]   ;;  %s1778_s5 = inlined_call_operand.vmem [shape: f32[1,256], index: 5, kind: input, shape index: {}]   ;;  %s1779_s6 = inlined_call_operand.<no memory space> [shape: f32[1,1], index: 6, kind: input, shape index: {}]   ;;  %s1780_s7 = inlined_call_operand.vmem [shape: f32[384,128], index: 7, kind: output, shape index: {}]  }
   0x1   :  { %12 = sst [smem:[#allocation2]] %s1779_s6 }
   0x2 LB: > { %s1173_s27 = sadd.s32 4294967295, %s1409_s26   ;;  %p1177_p0 = scmp.ge.s32.totalorder %s1409_s26, 1  ;;  %s1409_s26 = sphi %s1455_s26, %s18_s26  }
   0x3   : > { %p239_p1 = scmp.lt.s32.totalorder %s1409_s26, 4 }
   0x5   : > { %p240_p2 = pnand %p1177_p0, %p239_p1 }
   0x6   : > { %v1277_v0 = vld [vmem:[%s1774_s1 + $0x4] ss:$8 sps:$4 sm:$0xff] (!%p240_p2)   ;;  %s1178_s6 = sshll.u32 (!%p240_p2), %s1173_s27, 4  ;;  %v1279_v1 = vld [vmem:[%s1774_s1] ss:$8 sps:$4 sm:$0xff] (!%p240_p2)   ;;  %v1411_v2 = vmov (!%p240_p2), 0   ;;  %v306_v45 = vlaneseq (!%p240_p2) }
   0x7   : > { %243 = sbr.rel (%p240_p2) target bundleno = 692 (0x2b4), region = 48  ;;  %433 = vmatprep.mubr.bf16.mxu0 (!%p240_p2), %v1411_v2  ;;  %p272_p3 = scmp.lt.s32.totalorder (!%p240_p2), %s1178_s6, 47  ;;  %401 = vmatprep.subr.bf16.mxu0 (!%p240_p2), %v1277_v0  ;;  %v1280_v3 = vld [vmem:[%s1774_s1 + $0x14] ss:$8 sps:$4 sm:$0xff] (!%p240_p2)   ;;  %v1282_v4 = vld [vmem:[%s1774_s1 + $0x10] ss:$8 sps:$4 sm:$0xff] (!%p240_p2)  }
   0x8   : > { %402 = vmatpush1.bf16.msra.mxu0 (!%p240_p2), %v1279_v1  ;;  %v1293_v5 = vld [vmem:[%s1776_s3 + $0x4] ss:$8 sps:$4 sm:$0xff] (!%p240_p2)   ;;  %v1291_v6 = vld [vmem:[%s1776_s3] ss:$8 sps:$4 sm:$0xff] (!%p240_p2)   ;;  %v1296_v7 = vld [vmem:[%s1776_s3 + $0x14] ss:$8 sps:$4 sm:$0xff] (!%p240_p2)  }
   0x9   : > { %403 = vmatprep.subr.bf16.mxu0 (!%p240_p2), %v1280_v3  ;;  %1236 = vmatprep.subr.bf16.mxu1 (!%p240_p2), %v1293_v5  ;;  %vm376_vm0 = vcmask (!%p240_p2), 261120   ;;  %v1294_v9 = vld [vmem:[%s1776_s3 + $0x10] ss:$8 sps:$4 sm:$0xff] (!%p240_p2)   ;;  %v1299_v10 = vld [vmem:[%s1776_s3 + $0x24] ss:$8 sps:$4 sm:$0xff] (!%p240_p2)   ;;  %v307_v46 = vshrl.u32 (!%p240_p2), %v306_v45, 7 }
   0xa   : > { %1252 = vmatpush1.bf16.msra.mxu1 (!%p240_p2), %v1291_v6  ;;  %v1297_v11 = vld [vmem:[%s1776_s3 + $0x20] ss:$8 sps:$4 sm:$0xff] (!%p240_p2)   ;;  %v1302_v13 = vld [vmem:[%s1776_s3 + $0x34] ss:$8 sps:$4 sm:$0xff] (!%p240_p2)   ;;  %v1300_v14 = vld [vmem:[%s1776_s3 + $0x30] ss:$8 sps:$4 sm:$0xff] (!%p240_p2)  }
   0xb   : > { %1237 = vmatprep.subr.bf16.mxu1 (!%p240_p2), %v1296_v7  ;;  %v1305_v15 = vld [vmem:[%s1776_s3 + $0x44] ss:$8 sps:$4 sm:$0xff] (!%p240_p2)   ;;  %v1303_v16 = vld [vmem:[%s1776_s3 + $0x40] ss:$8 sps:$4 sm:$0xff] (!%p240_p2)   ;;  %v1308_v17 = vld [vmem:[%s1776_s3 + $0x54] ss:$8 sps:$4 sm:$0xff] (!%p240_p2)  }
   0xc   : > { %404 = vmatpush1.bf16.msra.mxu0 (!%p240_p2), %v1282_v4  ;;  %v1306_v19 = vld [vmem:[%s1776_s3 + $0x50] ss:$8 sps:$4 sm:$0xff] (!%p240_p2)   ;;  %v1311_v20 = vld [vmem:[%s1776_s3 + $0x64] ss:$8 sps:$4 sm:$0xff] (!%p240_p2)   ;;  %v1309_v21 = vld [vmem:[%s1776_s3 + $0x60] ss:$8 sps:$4 sm:$0xff] (!%p240_p2)  }
   0xd   : > { %766 = vmatprep.subr.bf16.mxu0 (!%p240_p2), %v1293_v5  ;;  %v1314_v23 = vld [vmem:[%s1776_s3 + $0x74] ss:$8 sps:$4 sm:$0xff] (!%p240_p2)   ;;  %v1312_v24 = vld [vmem:[%s1776_s3 + $0x70] ss:$8 sps:$4 sm:$0xff] (!%p240_p2)   ;;  %v1317_v25 = vld [vmem:[%s1776_s3 + $0x84] ss:$8 sps:$4 sm:$0xff] (!%p240_p2)  }
   0xe   : > { %s1782_s6 = smov (!%p272_p3, %s1178_s6), 47  ;;  %1253 = vmatpush1.bf16.msra.mxu1 %v1294_v9  ;;  %v1315_v26 = vld [vmem:[%s1776_s3 + $0x80] ss:$8 sps:$4 sm:$0xff]   ;;  %v1320_v27 = vld [vmem:[%s1776_s3 + $0x94] ss:$8 sps:$4 sm:$0xff]   ;;  %v1603_v47 = vsub.s32 0, %v307_v46 }
   0xf   : > { %s1179_s17 = sshll.u32 %s1782_s6, 2  ;;  %1238 = vmatprep.subr.bf16.mxu1 %v1299_v10  ;;  %v1318_v29 = vld [vmem:[%s1776_s3 + $0x90] ss:$8 sps:$4 sm:$0xff]   ;;  %v1323_v30 = vld [vmem:[%s1776_s3 + $0xa4] ss:$8 sps:$4 sm:$0xff]   ;;  %v1608_v49 = vsub.s32 1, %v307_v46 }
  0x10   : > { %s1491_s22 = scalar_lea.vmem %s1773_s0, %s1179_s17  ;;  %v1321_v31 = vld [vmem:[%s1776_s3 + $0xa0] ss:$8 sps:$4 sm:$0xff]   ;;  %v1326_v32 = vld [vmem:[%s1776_s3 + $0xb4] ss:$8 sps:$4 sm:$0xff]   ;;  %v1324_v34 = vld [vmem:[%s1776_s3 + $0xb0] ss:$8 sps:$4 sm:$0xff]  }
  0x11   : > { %v1283_v8 = vld [vmem:[%s1491_s22] sm:$0xff]   ;;  %v1284_v12 = vld [vmem:[%s1491_s22 + $0x8] sm:$0xff]   ;;  %v1285_v18 = vld [vmem:[%s1491_s22 + $0x10] sm:$0xff]   ;;  %s1003_s23 = sld [smem:[#allocation2]]  ;;  %s1181_s24 = sshll.u32 %s1782_s6, 3 }
  0x12   : > { %1194 = vmatmul.mubr.msk.bf16.vlgmr.msra.gmra.mrb[0].mxu0 %vm376_vm0, %v1283_v8  ;;  %1254 = vmatpush1.bf16.msra.mxu1 %v1297_v11  ;;  %v1286_v22 = vld [vmem:[%s1491_s22 + $0x18] sm:$0xff]   ;;  %v1287_v28 = vld [vmem:[%s1491_s22 + $0x20] sm:$0xff]   ;;  %v1288_v33 = vld [vmem:[%s1491_s22 + $0x28] sm:$0xff]   ;;  %s1744_s28 = scalar_lea.vmem %s1780_s7, %s1181_s24 }
  0x13   : > { %443 = vmatprep.mubr.bf16.mxu0 %v1411_v2  ;;  %767 = vmatpush1.bf16.msra.mxu0 %v1291_v6  ;;  %v1329_v35 = vld [vmem:[%s1776_s3 + $0xc4] ss:$8 sps:$4 sm:$0xff]   ;;  %v1327_v36 = vld [vmem:[%s1776_s3 + $0xc0] ss:$8 sps:$4 sm:$0xff]   ;;  %v1332_v37 = vld [vmem:[%s1776_s3 + $0xd4] ss:$8 sps:$4 sm:$0xff]  }
  0x14   : > { %768 = vmatprep.subr.bf16.mxu0 %v1296_v7  ;;  %1239 = vmatprep.subr.bf16.mxu1 %v1302_v13  ;;  %v1289_v38 = vld [vmem:[%s1491_s22 + $0x30] sm:$0xff]   ;;  %v1290_v40 = vld [vmem:[%s1491_s22 + $0x38] sm:$0xff]   ;;  %v1335_v41 = vld [vmem:[%s1776_s3 + $0xe4] ss:$8 sps:$4 sm:$0xff]  }
  0x15   : > { %v1330_v39 = vld [vmem:[%s1776_s3 + $0xd0] ss:$8 sps:$4 sm:$0xff]   ;;  %v1333_v42 = vld [vmem:[%s1776_s3 + $0xe0] ss:$8 sps:$4 sm:$0xff]   ;;  %v1338_v43 = vld [vmem:[%s1776_s3 + $0xf4] ss:$8 sps:$4 sm:$0xff]  }
  0x16   : > { %1255 = vmatpush1.bf16.msra.mxu1 %v1300_v14  ;;  %v1336_v44 = vld [vmem:[%s1776_s3 + $0xf0] ss:$8 sps:$4 sm:$0xff]   ;;  %v304_v48 = vld [vmem:[%s1775_s2] sm:$0x3] }
  0x17   : > { %769 = vmatpush1.bf16.msra.mxu0 %v1294_v9  ;;  %1240 = vmatprep.subr.bf16.mxu1 %v1305_v15  ;;  %v1611_v50 = vrot.slane %v304_v48, %v1603_v47  ;;  %v1614_v51 = vrot.slane %v304_v48, %v1608_v49 }
  0x18   : > { %770 = vmatprep.subr.bf16.mxu0 %v1299_v10 }
  0x1a   : > { %1195 = vmatmul.mubr.msk.bf16.gmra.mrb[4].mxu0 %vm376_vm0, %v1284_v12  ;;  %1256 = vmatpush1.bf16.msra.mxu1 %v1303_v16 }
  0x1b   : > { %453 = vmatprep.mubr.bf16.mxu0 %v1411_v2  ;;  %771 = vmatpush1.bf16.msra.mxu0 %v1297_v11 }
  0x1c   : > { %772 = vmatprep.subr.bf16.mxu0 %v1302_v13  ;;  %1241 = vmatprep.subr.bf16.mxu1 %v1308_v17 }
  0x1e   : > { %1257 = vmatpush1.bf16.msra.mxu1 %v1306_v19 }
  0x1f   : > { %773 = vmatpush1.bf16.msra.mxu0 %v1300_v14  ;;  %1242 = vmatprep.subr.bf16.mxu1 %v1311_v20 }
  0x20   : > { %774 = vmatprep.subr.bf16.mxu0 %v1305_v15 }
  0x22   : > { %1196 = vmatmul.mubr.msk.bf16.gmra.mrb[8].mxu0 %vm376_vm0, %v1285_v18  ;;  %1258 = vmatpush1.bf16.msra.mxu1 %v1309_v21 }
  0x23   : > { %463 = vmatprep.mubr.bf16.mxu0 %v1411_v2  ;;  %775 = vmatpush1.bf16.msra.mxu0 %v1303_v16 }
  0x24   : > { %776 = vmatprep.subr.bf16.mxu0 %v1308_v17  ;;  %1243 = vmatprep.subr.bf16.mxu1 %v1314_v23 }
  0x26   : > { %1259 = vmatpush1.bf16.msra.mxu1 %v1312_v24 }
  0x27   : > { %777 = vmatpush1.bf16.msra.mxu0 %v1306_v19  ;;  %1244 = vmatprep.subr.bf16.mxu1 %v1317_v25 }
  0x28   : > { %778 = vmatprep.subr.bf16.mxu0 %v1311_v20 }
  0x2a   : > { %1197 = vmatmul.mubr.msk.bf16.gmra.mrb[12].mxu0 %vm376_vm0, %v1286_v22  ;;  %1260 = vmatpush1.bf16.msra.mxu1 %v1315_v26 }
  0x2b   : > { %473 = vmatprep.mubr.bf16.mxu0 %v1411_v2  ;;  %779 = vmatpush1.bf16.msra.mxu0 %v1309_v21 }
  0x2c   : > { %780 = vmatprep.subr.bf16.mxu0 %v1314_v23  ;;  %1245 = vmatprep.subr.bf16.mxu1 %v1320_v27 }
  0x2e   : > { %1261 = vmatpush1.bf16.msra.mxu1 %v1318_v29 }
  0x2f   : > { %781 = vmatpush1.bf16.msra.mxu0 %v1312_v24  ;;  %1246 = vmatprep.subr.bf16.mxu1 %v1323_v30 }
  0x30   : > { %782 = vmatprep.subr.bf16.mxu0 %v1317_v25 }
  0x32   : > { %1198 = vmatmul.mubr.msk.bf16.gmra.mrb[16].mxu0 %vm376_vm0, %v1287_v28  ;;  %1262 = vmatpush1.bf16.msra.mxu1 %v1321_v31 }
  0x33   : > { %483 = vmatprep.mubr.bf16.mxu0 %v1411_v2  ;;  %783 = vmatpush1.bf16.msra.mxu0 %v1315_v26 }
  0x34   : > { %784 = vmatprep.subr.bf16.mxu0 %v1320_v27  ;;  %1247 = vmatprep.subr.bf16.mxu1 %v1326_v32 }
  0x36   : > { %1263 = vmatpush1.bf16.msra.mxu1 %v1324_v34 }
  0x37   : > { %785 = vmatpush1.bf16.msra.mxu0 %v1318_v29  ;;  %1248 = vmatprep.subr.bf16.mxu1 %v1329_v35 }
  0x38   : > { %786 = vmatprep.subr.bf16.mxu0 %v1323_v30 }
  0x3a   : > { %1199 = vmatmul.mubr.msk.bf16.gmra.mrb[20].mxu0 %vm376_vm0, %v1288_v33  ;;  %1264 = vmatpush1.bf16.msra.mxu1 %v1327_v36 }
  0x3b   : > { %493 = vmatprep.mubr.bf16.mxu0 %v1411_v2  ;;  %787 = vmatpush1.bf16.msra.mxu0 %v1321_v31 }
  0x3c   : > { %788 = vmatprep.subr.bf16.mxu0 %v1326_v32  ;;  %1249 = vmatprep.subr.bf16.mxu1 %v1332_v37 }
  0x3e   : > { %1265 = vmatpush1.bf16.msra.mxu1 %v1330_v39 }
  0x3f   : > { %789 = vmatpush1.bf16.msra.mxu0 %v1324_v34  ;;  %1250 = vmatprep.subr.bf16.mxu1 %v1335_v41 }
  0x40   : > { %790 = vmatprep.subr.bf16.mxu0 %v1329_v35 }
  0x42   : > { %1200 = vmatmul.mubr.msk.bf16.gmra.mrb[24].mxu0 %vm376_vm0, %v1289_v38  ;;  %1266 = vmatpush1.bf16.msra.mxu1 %v1333_v42 }
  0x43   : > { %503 = vmatprep.mubr.bf16.mxu0 %v1411_v2  ;;  %791 = vmatpush1.bf16.msra.mxu0 %v1327_v36 }
  0x44   : > { %792 = vmatprep.subr.bf16.mxu0 %v1332_v37  ;;  %1251 = vmatprep.subr.bf16.mxu1 %v1338_v43 }
  0x46   : > { %1267 = vmatpush1.bf16.msra.mxu1 %v1336_v44 }
  0x47   : > { %793 = vmatpush1.bf16.msra.mxu0 %v1330_v39 }
  0x48   : > { %794 = vmatprep.subr.bf16.mxu0 %v1335_v41 }
  0x4a   : > { %1201 = vmatmul.mubr.msk.bf16.gmra.mrb[28].mxu0 %vm376_vm0, %v1290_v40 }
  0x4b   : > { %795 = vmatpush1.bf16.msra.mxu0 %v1333_v42 }
  0x4c   : > { %796 = vmatprep.subr.bf16.mxu0 %v1338_v43 }
  0x4f   : > { %797 = vmatpush1.bf16.msra.mxu0 %v1336_v44 }
  0xe5   : > { %v435_v52 = vpop.f32.mrb[0].mxu0 }
  0xe6   : > { %v436_v53 = vadd.f32 %v435_v52, %v1611_v50  ;;  %v437_v54 = vpop.f32.mrb[1].mxu0 }
  0xe7   : > { %v438_v55 = vadd.f32 %v437_v54, %v1614_v51  ;;  %v439_v56 = vpop.f32.mrb[2].mxu0 }
  0xe8   : > { %v440_v57 = vadd.f32 %v439_v56, %v1611_v50  ;;  %v441_v58 = vpop.f32.mrb[3].mxu0  ;;  %v514_v60 = vmax.f32 %v436_v53, 0.0 }
  0xe9   : > { %v442_v59 = vadd.f32 %v441_v58, %v1614_v51  ;;  %v515_v62 = vmax.f32 %v438_v55, 0.0 }
  0xea   : > { %v516_v61 = vmax.f32 %v440_v57, 0.0 }
  0xeb   : > { %v517_v63 = vmax.f32 %v442_v59, 0.0 }
  0xec   : > { %v546_v0 = vpack.c.bf16 %v516_v61, %v514_v60 }
  0xed   : > { %v547_v1 = vpack.c.bf16 %v517_v63, %v515_v62  ;;  %v445_v2 = vpop.f32.mrb[4].mxu0 }
  0xee   : > { %v446_v3 = vadd.f32 %v445_v2, %v1611_v50  ;;  %v447_v4 = vpop.f32.mrb[5].mxu0 }
  0xef   : > { %v448_v5 = vadd.f32 %v447_v4, %v1614_v51  ;;  %v449_v6 = vpop.f32.mrb[6].mxu0  ;;  %798 = vmatprep.mubr.bf16.mxu0 %v547_v1 }
  0xf0   : > { %v450_v7 = vadd.f32 %v449_v6, %v1611_v50  ;;  %v451_v8 = vpop.f32.mrb[7].mxu0  ;;  %799 = vmatmul.mubr.bf16.vlgmr.msra.gmra.mrb[32].mxu0 %v546_v0  ;;  %v518_v10 = vmax.f32 %v446_v3, 0.0 }
  0xf1   : > { %v452_v9 = vadd.f32 %v451_v8, %v1614_v51  ;;  %v519_v12 = vmax.f32 %v448_v5, 0.0 }
  0xf2   : > { %v520_v11 = vmax.f32 %v450_v7, 0.0 }
  0xf3   : > { %v521_v13 = vmax.f32 %v452_v9, 0.0 }
  0xf4   : > { %v548_v14 = vpack.c.bf16 %v520_v11, %v518_v10 }
  0xf5   : > { %v549_v15 = vpack.c.bf16 %v521_v13, %v519_v12  ;;  %v455_v16 = vpop.f32.mrb[8].mxu0 }
  0xf6   : > { %v456_v17 = vadd.f32 %v455_v16, %v1611_v50  ;;  %v457_v18 = vpop.f32.mrb[9].mxu0 }
  0xf7   : > { %v458_v19 = vadd.f32 %v457_v18, %v1614_v51  ;;  %v459_v20 = vpop.f32.mrb[10].mxu0  ;;  %808 = vmatprep.mubr.bf16.mxu0 %v549_v15 }
  0xf8   : > { %v460_v21 = vadd.f32 %v459_v20, %v1611_v50  ;;  %v461_v22 = vpop.f32.mrb[11].mxu0  ;;  %809 = vmatmul.mubr.bf16.gmra.mrb[36].mxu0 %v548_v14  ;;  %v522_v24 = vmax.f32 %v456_v17, 0.0 }
  0xf9   : > { %v462_v23 = vadd.f32 %v461_v22, %v1614_v51  ;;  %v523_v26 = vmax.f32 %v458_v19, 0.0 }
  0xfa   : > { %v524_v25 = vmax.f32 %v460_v21, 0.0 }
  0xfb   : > { %v525_v27 = vmax.f32 %v462_v23, 0.0 }
  0xfc   : > { %v550_v28 = vpack.c.bf16 %v524_v25, %v522_v24 }
  0xfd   : > { %v551_v29 = vpack.c.bf16 %v525_v27, %v523_v26  ;;  %v465_v30 = vpop.f32.mrb[12].mxu0 }
  0xfe   : > { %v466_v31 = vadd.f32 %v465_v30, %v1611_v50  ;;  %v467_v32 = vpop.f32.mrb[13].mxu0 }
  0xff   : > { %v468_v33 = vadd.f32 %v467_v32, %v1614_v51  ;;  %v469_v34 = vpop.f32.mrb[14].mxu0  ;;  %818 = vmatprep.mubr.bf16.mxu0 %v551_v29 }
 0x100   : > { %v470_v35 = vadd.f32 %v469_v34, %v1611_v50  ;;  %v471_v36 = vpop.f32.mrb[15].mxu0  ;;  %819 = vmatmul.mubr.bf16.gmra.mrb[40].mxu0 %v550_v28  ;;  %v526_v38 = vmax.f32 %v466_v31, 0.0 }
 0x101   : > { %v472_v37 = vadd.f32 %v471_v36, %v1614_v51  ;;  %v527_v40 = vmax.f32 %v468_v33, 0.0 }
 0x102   : > { %v528_v39 = vmax.f32 %v470_v35, 0.0 }
 0x103   : > { %v529_v41 = vmax.f32 %v472_v37, 0.0 }
 0x104   : > { %v552_v42 = vpack.c.bf16 %v528_v39, %v526_v38 }
 0x105   : > { %v475_v43 = vpop.f32.mrb[16].mxu0  ;;  %v553_v44 = vpack.c.bf16 %v529_v41, %v527_v40  ;;  %v594_v40 = vld [vmem:[%s1777_s4] sm:$0x3] }
 0x106   : > { %v476_v45 = vadd.f32 %v475_v43, %v1611_v50  ;;  %v477_v46 = vpop.f32.mrb[17].mxu0  ;;  %v1652_v41 = vrot.slane %v594_v40, %v1603_v47 }
 0x107   : > { %v478_v48 = vadd.f32 %v477_v46, %v1614_v51  ;;  %v479_v52 = vpop.f32.mrb[18].mxu0  ;;  %828 = vmatprep.mubr.bf16.mxu1 %v553_v44 }
 0x108   : > { %v480_v53 = vadd.f32 %v479_v52, %v1611_v50  ;;  %v481_v54 = vpop.f32.mrb[19].mxu0  ;;  %829 = vmatmul.mubr.bf16.vlgmr.msra.gmra.mrb[0].mxu1 %v552_v42  ;;  %v530_v56 = vmax.f32 %v476_v45, 0.0 }
 0x109   : > { %v482_v55 = vadd.f32 %v481_v54, %v1614_v51  ;;  %v531_v58 = vmax.f32 %v478_v48, 0.0 }
 0x10a   : > { %v532_v57 = vmax.f32 %v480_v53, 0.0 }
 0x10b   : > { %v533_v59 = vmax.f32 %v482_v55, 0.0 }
 0x10c   : > { %v554_v60 = vpack.c.bf16 %v532_v57, %v530_v56 }
 0x10d   : > { %v555_v61 = vpack.c.bf16 %v533_v59, %v531_v58  ;;  %v485_v62 = vpop.f32.mrb[20].mxu0 }
 0x10e   : > { %v486_v63 = vadd.f32 %v485_v62, %v1611_v50  ;;  %v487_v0 = vpop.f32.mrb[21].mxu0 }
 0x10f   : > { %v488_v1 = vadd.f32 %v487_v0, %v1614_v51  ;;  %v489_v2 = vpop.f32.mrb[22].mxu0  ;;  %838 = vmatprep.mubr.bf16.mxu1 %v555_v61 }
 0x110   : > { %v490_v3 = vadd.f32 %v489_v2, %v1611_v50  ;;  %v491_v4 = vpop.f32.mrb[23].mxu0  ;;  %839 = vmatmul.mubr.bf16.gmra.mrb[4].mxu1 %v554_v60  ;;  %v534_v6 = vmax.f32 %v486_v63, 0.0 }
 0x111   : > { %v492_v5 = vadd.f32 %v491_v4, %v1614_v51  ;;  %v535_v8 = vmax.f32 %v488_v1, 0.0 }
 0x112   : > { %v536_v7 = vmax.f32 %v490_v3, 0.0 }
 0x113   : > { %v537_v9 = vmax.f32 %v492_v5, 0.0 }
 0x114   : > { %v556_v10 = vpack.c.bf16 %v536_v7, %v534_v6 }
 0x115   : > { %v557_v11 = vpack.c.bf16 %v537_v9, %v535_v8  ;;  %v495_v12 = vpop.f32.mrb[24].mxu0 }
 0x116   : > { %v496_v13 = vadd.f32 %v495_v12, %v1611_v50  ;;  %v497_v14 = vpop.f32.mrb[25].mxu0 }
 0x117   : > { %v498_v15 = vadd.f32 %v497_v14, %v1614_v51  ;;  %v499_v16 = vpop.f32.mrb[26].mxu0  ;;  %848 = vmatprep.mubr.bf16.mxu1 %v557_v11 }
 0x118   : > { %v500_v17 = vadd.f32 %v499_v16, %v1611_v50  ;;  %v501_v18 = vpop.f32.mrb[27].mxu0  ;;  %849 = vmatmul.mubr.bf16.gmra.mrb[8].mxu1 %v556_v10  ;;  %v538_v20 = vmax.f32 %v496_v13, 0.0 }
 0x119   : > { %v502_v19 = vadd.f32 %v501_v18, %v1614_v51  ;;  %v539_v22 = vmax.f32 %v498_v15, 0.0 }
 0x11a   : > { %v540_v21 = vmax.f32 %v500_v17, 0.0 }
 0x11b   : > { %v541_v23 = vmax.f32 %v502_v19, 0.0 }
 0x11c   : > { %v558_v24 = vpack.c.bf16 %v540_v21, %v538_v20 }
 0x11d   : > { %v559_v25 = vpack.c.bf16 %v541_v23, %v539_v22  ;;  %v505_v26 = vpop.f32.mrb[28].mxu0 }
 0x11e   : > { %v506_v27 = vadd.f32 %v505_v26, %v1611_v50  ;;  %v507_v28 = vpop.f32.mrb[29].mxu0 }
 0x11f   : > { %v508_v29 = vadd.f32 %v507_v28, %v1614_v51  ;;  %v509_v30 = vpop.f32.mrb[30].mxu0  ;;  %858 = vmatprep.mubr.bf16.mxu1 %v559_v25 }
 0x120   : > { %v510_v31 = vadd.f32 %v509_v30, %v1611_v50  ;;  %v511_v32 = vpop.f32.mrb[31].mxu0  ;;  %859 = vmatmul.mubr.bf16.gmra.mrb[12].mxu1 %v558_v24  ;;  %v542_v34 = vmax.f32 %v506_v27, 0.0  ;;  %v1655_v50 = vrot.slane %v594_v40, %v1608_v49 }
 0x121   : > { %v512_v33 = vadd.f32 %v511_v32, %v1614_v51  ;;  %v543_v36 = vmax.f32 %v508_v29, 0.0  ;;  %v911_v51 = vld [vmem:[%s1778_s5] sm:$0x3] }
 0x122   : > { %v544_v35 = vmax.f32 %v510_v31, 0.0  ;;  %v1662_v45 = vrot.slane %v911_v51, %v1603_v47  ;;  %v1666_v52 = vrot.slane %v911_v51, %v1608_v49 }
 0x123   : > { %v545_v37 = vmax.f32 %v512_v33, 0.0 }
 0x124   : > { %v560_v38 = vpack.c.bf16 %v544_v35, %v542_v34 }
 0x125   : > { %v561_v39 = vpack.c.bf16 %v545_v37, %v543_v36 }
 0x127   : > { %868 = vmatprep.mubr.bf16.mxu1 %v561_v39 }
 0x128   : > { %869 = vmatmul.mubr.bf16.gmra.mrb[16].mxu1 %v560_v38 }
 0x1c3   : > { %v800_v42 = vpop.f32.mrb[32].mxu0 }
 0x1c4   : > { %v801_v43 = vadd.f32 %v800_v42, %v1652_v41  ;;  %v802_v44 = vpop.f32.mrb[33].mxu0 }
 0x1c5   : > { %v803_v46 = vadd.f32 %v802_v44, %v1655_v50  ;;  %v804_v48 = vpop.f32.mrb[34].mxu0 }
 0x1c6   : > { %v879_v53 = vmax.f32 %v801_v43, 0.0  ;;  %v805_v54 = vadd.f32 %v804_v48, %v1652_v41  ;;  %v806_v55 = vpop.f32.mrb[35].mxu0 }
 0x1c7   : > { %v880_v56 = vmax.f32 %v803_v46, 0.0  ;;  %v807_v57 = vadd.f32 %v806_v55, %v1655_v50 }
 0x1c8   : > { %v881_v58 = vmax.f32 %v805_v54, 0.0  ;;  %v923_v59 = vmul.f32 %v1662_v45, %v879_v53 }
 0x1c9   : > { %v882_v60 = vmax.f32 %v807_v57, 0.0  ;;  %v924_v47 = vmul.f32 %v1666_v52, %v880_v56 }
 0x1ca   : > { %v925_v61 = vmul.f32 %v1662_v45, %v881_v58 }
 0x1cb   : > { %v926_v62 = vmul.f32 %v1666_v52, %v882_v60  ;;  %v810_v63 = vpop.f32.mrb[36].mxu0  ;;  %v955_v49 = vadd.f32 %v924_v47, %v923_v59 }
 0x1cc   : > { %v811_v0 = vadd.f32 %v810_v63, %v1652_v41  ;;  %v812_v1 = vpop.f32.mrb[37].mxu0 }
 0x1cd   : > { %v813_v2 = vadd.f32 %v812_v1, %v1655_v50  ;;  %v814_v3 = vpop.f32.mrb[38].mxu0  ;;  %956 = vadd.xlane.f32.xlu0 %v955_v49  ;;  %v958_v4 = vadd.f32 %v926_v62, %v925_v61 }
 0x1ce   : > { %v883_v5 = vmax.f32 %v811_v0, 0.0  ;;  %v815_v6 = vadd.f32 %v814_v3, %v1652_v41  ;;  %v816_v7 = vpop.f32.mrb[39].mxu0 }
 0x1cf   : > { %v884_v8 = vmax.f32 %v813_v2, 0.0  ;;  %v817_v9 = vadd.f32 %v816_v7, %v1655_v50 }
 0x1d0   : > { %v885_v10 = vmax.f32 %v815_v6, 0.0  ;;  %v927_v11 = vmul.f32 %v1662_v45, %v883_v5 }
 0x1d1   : > { %v886_v12 = vmax.f32 %v817_v9, 0.0  ;;  %959 = vadd.xlane.f32.xlu0 %v958_v4  ;;  %v928_v13 = vmul.f32 %v1666_v52, %v884_v8 }
 0x1d2   : > { %v929_v14 = vmul.f32 %v1662_v45, %v885_v10 }
 0x1d3   : > { %v930_v15 = vmul.f32 %v1666_v52, %v886_v12  ;;  %v820_v16 = vpop.f32.mrb[40].mxu0  ;;  %v961_v17 = vadd.f32 %v928_v13, %v927_v11 }
 0x1d4   : > { %v821_v18 = vadd.f32 %v820_v16, %v1652_v41  ;;  %v822_v19 = vpop.f32.mrb[41].mxu0 }
 0x1d5   : > { %v823_v20 = vadd.f32 %v822_v19, %v1655_v50  ;;  %v824_v21 = vpop.f32.mrb[42].mxu0  ;;  %962 = vadd.xlane.f32.xlu1 %v961_v17  ;;  %v964_v22 = vadd.f32 %v930_v15, %v929_v14 }
 0x1d6   : > { %v887_v23 = vmax.f32 %v821_v18, 0.0  ;;  %v825_v24 = vadd.f32 %v824_v21, %v1652_v41  ;;  %v826_v25 = vpop.f32.mrb[43].mxu0 }
 0x1d7   : > { %v888_v26 = vmax.f32 %v823_v20, 0.0  ;;  %v827_v27 = vadd.f32 %v826_v25, %v1655_v50 }
 0x1d8   : > { %v931_v28 = vmul.f32 %v1662_v45, %v887_v23  ;;  %v889_v29 = vmax.f32 %v825_v24, 0.0 }
 0x1d9   : > { %v932_v30 = vmul.f32 %v1666_v52, %v888_v26  ;;  %v890_v31 = vmax.f32 %v827_v27, 0.0  ;;  %965 = vadd.xlane.f32.xlu1 %v964_v22 }
 0x1da   : > { %v933_v32 = vmul.f32 %v1662_v45, %v889_v29 }
 0x1db   : > { %v934_v33 = vmul.f32 %v1666_v52, %v890_v31  ;;  %v830_v34 = vpop.f32.mrb[0].mxu1  ;;  %v967_v35 = vadd.f32 %v932_v30, %v931_v28 }
 0x1dc   : > { %v831_v36 = vadd.f32 %v830_v34, %v1652_v41  ;;  %v832_v37 = vpop.f32.mrb[1].mxu1 }
 0x1dd   : > { %v833_v38 = vadd.f32 %v832_v37, %v1655_v50  ;;  %v834_v39 = vpop.f32.mrb[2].mxu1  ;;  %968 = vadd.xlane.f32.xlu0 %v967_v35  ;;  %v970_v40 = vadd.f32 %v934_v33, %v933_v32 }
 0x1de   : > { %v891_v51 = vmax.f32 %v831_v36, 0.0  ;;  %v835_v42 = vadd.f32 %v834_v39, %v1652_v41  ;;  %v836_v43 = vpop.f32.mrb[3].mxu1 }
 0x1df   : > { %v892_v44 = vmax.f32 %v833_v38, 0.0  ;;  %v837_v46 = vadd.f32 %v836_v43, %v1655_v50  ;;  %971 = vadd.xlane.f32.xlu1 %v970_v40 }
 0x1e0   : > { %v935_v48 = vmul.f32 %v1662_v45, %v891_v51  ;;  %v893_v53 = vmax.f32 %v835_v42, 0.0 }
 0x1e1   : > { %v936_v54 = vmul.f32 %v1666_v52, %v892_v44  ;;  %v894_v55 = vmax.f32 %v837_v46, 0.0 }
 0x1e2   : > { %v937_v56 = vmul.f32 %v1662_v45, %v893_v53 }
 0x1e3   : > { %v938_v57 = vmul.f32 %v1666_v52, %v894_v55  ;;  %v840_v58 = vpop.f32.mrb[4].mxu1  ;;  %v973_v59 = vadd.f32 %v936_v54, %v935_v48 }
 0x1e4   : > { %v841_v60 = vadd.f32 %v840_v58, %v1652_v41  ;;  %v842_v47 = vpop.f32.mrb[5].mxu1 }
 0x1e5   : > { %v843_v61 = vadd.f32 %v842_v47, %v1655_v50  ;;  %v844_v62 = vpop.f32.mrb[6].mxu1  ;;  %974 = vadd.xlane.f32.xlu0 %v973_v59  ;;  %v976_v63 = vadd.f32 %v938_v57, %v937_v56 }
 0x1e6   : > { %v895_v49 = vmax.f32 %v841_v60, 0.0  ;;  %v845_v0 = vadd.f32 %v844_v62, %v1652_v41  ;;  %v846_v1 = vpop.f32.mrb[7].mxu1 }
 0x1e7   : > { %v896_v2 = vmax.f32 %v843_v61, 0.0  ;;  %v847_v3 = vadd.f32 %v846_v1, %v1655_v50  ;;  %977 = vadd.xlane.f32.xlu1 %v976_v63 }
 0x1e8   : > { %v939_v4 = vmul.f32 %v1662_v45, %v895_v49  ;;  %v897_v5 = vmax.f32 %v845_v0, 0.0 }
 0x1e9   : > { %v940_v6 = vmul.f32 %v1666_v52, %v896_v2  ;;  %v898_v7 = vmax.f32 %v847_v3, 0.0 }
 0x1ea   : > { %v941_v8 = vmul.f32 %v1662_v45, %v897_v5 }
 0x1eb   : > { %v942_v9 = vmul.f32 %v1666_v52, %v898_v7  ;;  %v850_v10 = vpop.f32.mrb[8].mxu1  ;;  %v979_v11 = vadd.f32 %v940_v6, %v939_v4 }
 0x1ec   : > { %v851_v12 = vadd.f32 %v850_v10, %v1652_v41  ;;  %v852_v13 = vpop.f32.mrb[9].mxu1 }
 0x1ed   : > { %v853_v14 = vadd.f32 %v852_v13, %v1655_v50  ;;  %v854_v15 = vpop.f32.mrb[10].mxu1  ;;  %980 = vadd.xlane.f32.xlu0 %v979_v11  ;;  %v982_v16 = vadd.f32 %v942_v9, %v941_v8 }
 0x1ee   : > { %v899_v17 = vmax.f32 %v851_v12, 0.0  ;;  %v855_v18 = vadd.f32 %v854_v15, %v1652_v41  ;;  %v856_v19 = vpop.f32.mrb[11].mxu1 }
 0x1ef   : > { %v900_v20 = vmax.f32 %v853_v14, 0.0  ;;  %v857_v21 = vadd.f32 %v856_v19, %v1655_v50  ;;  %983 = vadd.xlane.f32.xlu1 %v982_v16 }
 0x1f0   : > { %v943_v22 = vmul.f32 %v1662_v45, %v899_v17  ;;  %v901_v23 = vmax.f32 %v855_v18, 0.0 }
 0x1f1   : > { %v944_v24 = vmul.f32 %v1666_v52, %v900_v20  ;;  %v902_v25 = vmax.f32 %v857_v21, 0.0 }
 0x1f2   : > { %v945_v26 = vmul.f32 %v1662_v45, %v901_v23 }
 0x1f3   : > { %v946_v27 = vmul.f32 %v1666_v52, %v902_v25  ;;  %v860_v28 = vpop.f32.mrb[12].mxu1  ;;  %v985_v29 = vadd.f32 %v944_v24, %v943_v22 }
 0x1f4   : > { %v861_v30 = vadd.f32 %v860_v28, %v1652_v41  ;;  %v862_v31 = vpop.f32.mrb[13].mxu1 }
 0x1f5   : > { %v863_v32 = vadd.f32 %v862_v31, %v1655_v50  ;;  %v864_v33 = vpop.f32.mrb[14].mxu1  ;;  %986 = vadd.xlane.f32.xlu0 %v985_v29  ;;  %v988_v34 = vadd.f32 %v946_v27, %v945_v26 }
 0x1f6   : > { %v903_v35 = vmax.f32 %v861_v30, 0.0  ;;  %v865_v36 = vadd.f32 %v864_v33, %v1652_v41  ;;  %v866_v37 = vpop.f32.mrb[15].mxu1 }
 0x1f7   : > { %v904_v38 = vmax.f32 %v863_v32, 0.0  ;;  %v867_v39 = vadd.f32 %v866_v37, %v1655_v50  ;;  %989 = vadd.xlane.f32.xlu1 %v988_v34 }
 0x1f8   : > { %v947_v40 = vmul.f32 %v1662_v45, %v903_v35  ;;  %v905_v51 = vmax.f32 %v865_v36, 0.0 }
 0x1f9   : > { %v948_v42 = vmul.f32 %v1666_v52, %v904_v38  ;;  %v906_v43 = vmax.f32 %v867_v39, 0.0 }
 0x1fa   : > { %v949_v44 = vmul.f32 %v1662_v45, %v905_v51 }
 0x1fb   : > { %v950_v46 = vmul.f32 %v1666_v52, %v906_v43  ;;  %v870_v48 = vpop.f32.mrb[16].mxu1  ;;  %v991_v53 = vadd.f32 %v948_v42, %v947_v40 }
 0x1fc   : > { %v871_v54 = vadd.f32 %v870_v48, %v1652_v41  ;;  %v872_v55 = vpop.f32.mrb[17].mxu1 }
 0x1fd   : > { %v873_v56 = vadd.f32 %v872_v55, %v1655_v50  ;;  %v874_v57 = vpop.f32.mrb[18].mxu1  ;;  %992 = vadd.xlane.f32.xlu0 %v991_v53  ;;  %v994_v58 = vadd.f32 %v950_v46, %v949_v44 }
 0x1fe   : > { %v907_v59 = vmax.f32 %v871_v54, 0.0  ;;  %v875_v60 = vadd.f32 %v874_v57, %v1652_v41  ;;  %v876_v47 = vpop.f32.mrb[19].mxu1  ;;  %v1730_v41 = vstv %s1003_s23 }
 0x1ff   : > { %v908_v61 = vmax.f32 %v873_v56, 0.0  ;;  %v877_v62 = vadd.f32 %v876_v47, %v1655_v50  ;;  %995 = vadd.xlane.f32.xlu1 %v994_v58 }
 0x200   : > { %v951_v63 = vmul.f32 %v1662_v45, %v907_v59  ;;  %v909_v49 = vmax.f32 %v875_v60, 0.0 }
 0x201   : > { %v952_v0 = vmul.f32 %v1666_v52, %v908_v61  ;;  %v910_v1 = vmax.f32 %v877_v62, 0.0 }
 0x202   : > { %v953_v2 = vmul.f32 %v1662_v45, %v909_v49 }
 0x203   : > { %v954_v3 = vmul.f32 %v1666_v52, %v910_v1  ;;  %v997_v4 = vadd.f32 %v952_v0, %v951_v63 }
 0x205   : > { %998 = vadd.xlane.f32.xlu0 %v997_v4  ;;  %v1000_v5 = vadd.f32 %v954_v3, %v953_v2 }
 0x207   : > { %1001 = vadd.xlane.f32.xlu1 %v1000_v5 }
 0x25a   : > { %v957_v6 = vpop.xlane.xlu0 %956 }
 0x25b   : > { %v1005_v50 = vadd.f32 %v1730_v41, %v957_v6 }
 0x25d   : > { %v1021_v7 = vsub.f32 0.0, %v1005_v50 }
 0x25e   : > { %v960_v8 = vpop.xlane.xlu0 %959 }
 0x25f   : > { %v1037_v9 = vmul.f32 1.442695, %v1021_v7  ;;  %v1006_v10 = vadd.f32 %v1730_v41, %v960_v8 }
 0x261   : > { %1339 = vpow2.f32 %v1037_v9  ;;  %v1022_v11 = vsub.f32 0.0, %v1006_v10 }
 0x262   : > { %v963_v45 = vpop.xlane.xlu1 %962 }
 0x263   : > { %v1039_v12 = vmul.f32 1.442695, %v1022_v11  ;;  %v1007_v52 = vadd.f32 %v1730_v41, %v963_v45 }
 0x265   : > { %1341 = vpow2.f32 %v1039_v12  ;;  %v1023_v13 = vsub.f32 0.0, %v1007_v52 }
 0x266   : > { %v966_v14 = vpop.xlane.xlu1 %965 }
 0x267   : > { %v1041_v15 = vmul.f32 1.442695, %v1023_v13  ;;  %v1008_v16 = vadd.f32 %v1730_v41, %v966_v14 }
 0x269   : > { %1343 = vpow2.f32 %v1041_v15  ;;  %v1024_v17 = vsub.f32 0.0, %v1008_v16 }
 0x26a   : > { %v969_v18 = vpop.xlane.xlu0 %968 }
 0x26b   : > { %v1340_v19 = vpop.eup %1339  ;;  %v1043_v20 = vmul.f32 1.442695, %v1024_v17  ;;  %v1009_v21 = vadd.f32 %v1730_v41, %v969_v18 }
 0x26c   : > { %v1069_v22 = vadd.f32 1.0, %v1340_v19  ;;  %v972_v23 = vpop.xlane.xlu1 %971 }
 0x26d   : > { %1345 = vpow2.f32 %v1043_v20  ;;  %v1025_v24 = vsub.f32 0.0, %v1009_v21  ;;  %v1010_v25 = vadd.f32 %v1730_v41, %v972_v23 }
 0x26e   : > { %1347 = vrcp.f32 %v1069_v22 }
 0x26f   : > { %v1342_v26 = vpop.eup %1341  ;;  %v1045_v27 = vmul.f32 1.442695, %v1025_v24  ;;  %v1026_v28 = vsub.f32 0.0, %v1010_v25 }
 0x270   : > { %v1070_v29 = vadd.f32 1.0, %v1342_v26 }
 0x271   : > { %1349 = vpow2.f32 %v1045_v27  ;;  %v1047_v30 = vmul.f32 1.442695, %v1026_v28 }
 0x272   : > { %1351 = vrcp.f32 %v1070_v29  ;;  %v975_v31 = vpop.xlane.xlu0 %974 }
 0x273   : > { %v1344_v32 = vpop.eup %1343  ;;  %1353 = vpow2.f32 %v1047_v30  ;;  %v1011_v33 = vadd.f32 %v1730_v41, %v975_v31 }
 0x274   : > { %v1071_v34 = vadd.f32 1.0, %v1344_v32  ;;  %v978_v35 = vpop.xlane.xlu1 %977 }
 0x275   : > { %v1027_v36 = vsub.f32 0.0, %v1011_v33  ;;  %v1012_v37 = vadd.f32 %v1730_v41, %v978_v35 }
 0x276   : > { %1355 = vrcp.f32 %v1071_v34 }
 0x277   : > { %v1346_v38 = vpop.eup %1345  ;;  %v1049_v39 = vmul.f32 1.442695, %v1027_v36  ;;  %v1028_v40 = vsub.f32 0.0, %v1012_v37 }
 0x278   : > { %v1348_v51 = vpop.eup %1347  ;;  %v1072_v42 = vadd.f32 1.0, %v1346_v38 }
 0x279   : > { %1101 = vst [vmem:[%s1744_s28] sm:$0xff] %v1348_v51  ;;  %1357 = vpow2.f32 %v1049_v39  ;;  %v1051_v43 = vmul.f32 1.442695, %v1028_v40 }
 0x27a   : > { %1359 = vrcp.f32 %v1072_v42  ;;  %v981_v44 = vpop.xlane.xlu0 %980 }
 0x27b   : > { %v1350_v46 = vpop.eup %1349  ;;  %1361 = vpow2.f32 %v1051_v43  ;;  %v1013_v48 = vadd.f32 %v1730_v41, %v981_v44 }
 0x27c   : > { %v1352_v53 = vpop.eup %1351  ;;  %v1073_v54 = vadd.f32 1.0, %v1350_v46  ;;  %v984_v55 = vpop.xlane.xlu1 %983 }
 0x27d   : > { %v1354_v56 = vpop.eup %1353  ;;  %1102 = vst [vmem:[%s1744_s28 + $0x8] sm:$0xff] %v1352_v53  ;;  %v1029_v57 = vsub.f32 0.0, %v1013_v48  ;;  %v1014_v58 = vadd.f32 %v1730_v41, %v984_v55 }
 0x27e   : > { %1363 = vrcp.f32 %v1073_v54  ;;  %v1074_v59 = vadd.f32 1.0, %v1354_v56 }
 0x27f   : > { %v1053_v60 = vmul.f32 1.442695, %v1029_v57  ;;  %v1030_v47 = vsub.f32 0.0, %v1014_v58 }
 0x280   : > { %v1356_v61 = vpop.eup %1355  ;;  %1365 = vrcp.f32 %v1074_v59 }
 0x281   : > { %1103 = vst [vmem:[%s1744_s28 + $0x10] sm:$0xff] %v1356_v61  ;;  %1367 = vpow2.f32 %v1053_v60  ;;  %v1055_v62 = vmul.f32 1.442695, %v1030_v47 }
 0x282   : > { %v987_v63 = vpop.xlane.xlu0 %986 }
 0x283   : > { %v1358_v49 = vpop.eup %1357  ;;  %1369 = vpow2.f32 %v1055_v62  ;;  %v1015_v0 = vadd.f32 %v1730_v41, %v987_v63 }
 0x284   : > { %v1360_v1 = vpop.eup %1359  ;;  %v1075_v2 = vadd.f32 1.0, %v1358_v49  ;;  %v990_v3 = vpop.xlane.xlu1 %989 }
 0x285   : > { %v1362_v4 = vpop.eup %1361  ;;  %1104 = vst [vmem:[%s1744_s28 + $0x18] sm:$0xff] %v1360_v1  ;;  %v1031_v5 = vsub.f32 0.0, %v1015_v0  ;;  %v1016_v6 = vadd.f32 %v1730_v41, %v990_v3 }
 0x286   : > { %1371 = vrcp.f32 %v1075_v2  ;;  %v1076_v50 = vadd.f32 1.0, %v1362_v4 }
 0x287   : > { %v1057_v7 = vmul.f32 1.442695, %v1031_v5  ;;  %v1032_v8 = vsub.f32 0.0, %v1016_v6 }
 0x288   : > { %v1364_v9 = vpop.eup %1363  ;;  %1373 = vrcp.f32 %v1076_v50 }
 0x289   : > { %1105 = vst [vmem:[%s1744_s28 + $0x20] sm:$0xff] %v1364_v9  ;;  %1375 = vpow2.f32 %v1057_v7  ;;  %v1059_v10 = vmul.f32 1.442695, %v1032_v8 }
 0x28a   : > { %v1366_v11 = vpop.eup %1365  ;;  %v993_v45 = vpop.xlane.xlu0 %992 }
 0x28b   : > { %v1368_v12 = vpop.eup %1367  ;;  %1106 = vst [vmem:[%s1744_s28 + $0x28] sm:$0xff] %v1366_v11  ;;  %1377 = vpow2.f32 %v1059_v10  ;;  %v1017_v52 = vadd.f32 %v1730_v41, %v993_v45 }
 0x28c   : > { %v1077_v13 = vadd.f32 1.0, %v1368_v12  ;;  %v996_v14 = vpop.xlane.xlu1 %995 }
 0x28d   : > { %v1370_v15 = vpop.eup %1369  ;;  %v1033_v16 = vsub.f32 0.0, %v1017_v52  ;;  %v1018_v17 = vadd.f32 %v1730_v41, %v996_v14 }
 0x28e   : > { %1379 = vrcp.f32 %v1077_v13  ;;  %v1078_v18 = vadd.f32 1.0, %v1370_v15 }
 0x28f   : > { %v1061_v19 = vmul.f32 1.442695, %v1033_v16  ;;  %v1034_v20 = vsub.f32 0.0, %v1018_v17 }
 0x290   : > { %v1372_v21 = vpop.eup %1371  ;;  %1381 = vrcp.f32 %v1078_v18 }
 0x291   : > { %1107 = vst [vmem:[%s1744_s28 + $0x30] sm:$0xff] %v1372_v21  ;;  %1383 = vpow2.f32 %v1061_v19  ;;  %v1063_v22 = vmul.f32 1.442695, %v1034_v20 }
 0x292   : > { %v1374_v23 = vpop.eup %1373  ;;  %v999_v24 = vpop.xlane.xlu0 %998 }
 0x293   : > { %v1376_v25 = vpop.eup %1375  ;;  %1108 = vst [vmem:[%s1744_s28 + $0x38] sm:$0xff] %v1374_v23  ;;  %1385 = vpow2.f32 %v1063_v22  ;;  %v1019_v26 = vadd.f32 %v1730_v41, %v999_v24 }
 0x294   : > { %v1079_v27 = vadd.f32 1.0, %v1376_v25  ;;  %v1002_v28 = vpop.xlane.xlu1 %1001 }
 0x295   : > { %v1378_v29 = vpop.eup %1377  ;;  %v1035_v30 = vsub.f32 0.0, %v1019_v26  ;;  %v1020_v31 = vadd.f32 %v1730_v41, %v1002_v28 }
 0x296   : > { %1387 = vrcp.f32 %v1079_v27  ;;  %v1080_v32 = vadd.f32 1.0, %v1378_v29 }
 0x297   : > { %v1065_v33 = vmul.f32 1.442695, %v1035_v30  ;;  %v1036_v34 = vsub.f32 0.0, %v1020_v31 }
 0x298   : > { %v1380_v35 = vpop.eup %1379  ;;  %1389 = vrcp.f32 %v1080_v32 }
 0x299   : > { %1109 = vst [vmem:[%s1744_s28 + $0x40] sm:$0xff] %v1380_v35  ;;  %1391 = vpow2.f32 %v1065_v33  ;;  %v1067_v36 = vmul.f32 1.442695, %v1036_v34 }
 0x29a   : > { %v1382_v37 = vpop.eup %1381 }
 0x29b   : > { %v1384_v38 = vpop.eup %1383  ;;  %1110 = vst [vmem:[%s1744_s28 + $0x48] sm:$0xff] %v1382_v37  ;;  %1393 = vpow2.f32 %v1067_v36 }
 0x29c   : > { %v1081_v39 = vadd.f32 1.0, %v1384_v38 }
 0x29d   : > { %v1386_v40 = vpop.eup %1385 }
 0x29e   : > { %1395 = vrcp.f32 %v1081_v39  ;;  %v1082_v41 = vadd.f32 1.0, %v1386_v40 }
 0x2a0   : > { %v1388_v51 = vpop.eup %1387  ;;  %1397 = vrcp.f32 %v1082_v41 }
 0x2a1   : > { %1111 = vst [vmem:[%s1744_s28 + $0x50] sm:$0xff] %v1388_v51 }
 0x2a2   : > { %v1390_v42 = vpop.eup %1389 }
 0x2a3   : > { %v1392_v43 = vpop.eup %1391  ;;  %1112 = vst [vmem:[%s1744_s28 + $0x58] sm:$0xff] %v1390_v42 }
 0x2a4   : > { %v1083_v44 = vadd.f32 1.0, %v1392_v43 }
 0x2a5   : > { %v1394_v46 = vpop.eup %1393 }
 0x2a6   : > { %1399 = vrcp.f32 %v1083_v44  ;;  %v1084_v48 = vadd.f32 1.0, %v1394_v46 }
 0x2a8   : > { %v1396_v53 = vpop.eup %1395  ;;  %1401 = vrcp.f32 %v1084_v48 }
 0x2a9   : > { %1113 = vst [vmem:[%s1744_s28 + $0x60] sm:$0xff] %v1396_v53 }
 0x2aa   : > { %v1398_v54 = vpop.eup %1397 }
 0x2ab   : > { %1114 = vst [vmem:[%s1744_s28 + $0x68] sm:$0xff] %v1398_v54 }
 0x2b0   : > { %v1400_v55 = vpop.eup %1399 }
 0x2b1   : > { %1115 = vst [vmem:[%s1744_s28 + $0x70] sm:$0xff] %v1400_v55 }
 0x2b2   : > { %v1402_v56 = vpop.eup %1401 }
 0x2b3   : > { %1116 = vst [vmem:[%s1744_s28 + $0x78] sm:$0xff] %v1402_v56 }
 0x2b4 PF: > { %s18_s26 = sadd.s32 1, %s1409_s26  }
 0x2b5   : > { %p15_p4 = scmp.ge.s32.totalorder %s18_s26, 5  }
 0x2b7   :  { %17 = sbr.rel (!%p15_p4) target bundleno = 2 (0x2), region = 78 }

</bundles_post_ra>
